<compile_context>
chip_gen: v6e
topology: v6e:2x2x1
jax: 0.10.0
libtpu: 0.0.40
codegen_flags: <defaults>
</compile_context>

<pallas_src>
import jax
import jax.numpy as jnp
from jax.experimental import pallas as pl
from jax.experimental.pallas import tpu as pltpu

BN_EPS = 1e-5
LANE = 128


def _round_up(n, m):
    return (n + m - 1) // m * m


def mlp_kernel(x_ref,
               w0_ref, b0_ref,
               w1_ref, b1_ref,
               w2_ref, b2_ref,
               w3_ref, b3_ref,
               out_ref):
    # input: Linear(F, 512) with BN1 folded in, + ReLU
    h = jnp.dot(x_ref[...], w0_ref[...],
                preferred_element_type=jnp.float32) + b0_ref[...]
    h = jnp.maximum(h, 0.0)

    # layer_1: Linear(512, 128) with BN2 folded in, + ReLU (+ eval dropout = id)
    h = jnp.dot(h.astype(jnp.bfloat16), w1_ref[...],
                preferred_element_type=jnp.float32) + b1_ref[...]
    h = jnp.maximum(h, 0.0)

    # layer_2: Linear(128, 64) with BN3 folded in, + ReLU (+ eval dropout = id)
    h = jnp.dot(h.astype(jnp.bfloat16), w2_ref[...],
                preferred_element_type=jnp.float32) + b2_ref[...]
    h = jnp.maximum(h, 0.0)

    # output: Linear(64, C), C padded to 128 lanes for unmasked stores
    out_ref[...] = jnp.dot(h.astype(jnp.bfloat16), w3_ref[...],
                           preferred_element_type=jnp.float32) + b3_ref[...]


def _bn(h, g, b, m, v):
    return g * (h - m) * jax.lax.rsqrt(v + BN_EPS) + b


def _fold_bn(w, b, gamma, beta, mean, var):
    """Fold eval-mode BatchNorm into the preceding Linear. w:[in,out], b:[1,out]."""
    scale = gamma * jax.lax.rsqrt(var + BN_EPS)          # [1, out]
    return w * scale, (b - mean) * scale + beta


def spotify_mood_forward(x, params, *, block_batch=1024):
    """x: [B, num_features] float32. params: flat list of 20 arrays."""
    (w0, b0, g1, be1, m1, v1,
     w1, b1, g2, be2, m2, v2,
     w2, b2, g3, be3, m3, v3,
     w3, b3) = params

    B, F = x.shape
    C = w3.shape[-1]

    # Fold eval-mode BatchNorm into the preceding Linear layers.
    w0f, b0f = _fold_bn(w0, b0, g1, be1, m1, v1)
    w1f, b1f = _fold_bn(w1, b1, g2, be2, m2, v2)
    w2f, b2f = _fold_bn(w2, b2, g3, be3, m3, v3)

    # Zero-pad the first-layer contraction dim and the output dim to full
    # 128-lane tiles (standard MXU path, lane-dense output stores).
    Kp = _round_up(F, LANE)
    Cp = _round_up(C, LANE)
    w0f = jnp.pad(w0f, ((0, Kp - F), (0, 0)))
    w3p = jnp.pad(w3, ((0, 0), (0, Cp - C)))
    b3p = jnp.pad(b3, ((0, 0), (0, Cp - C)))

    # Batch tiling: stream (TB, Kp) x-tiles and (TB, Cp) out-tiles; weights
    # are resident in VMEM across the whole grid.
    TB = min(_round_up(block_batch, 8), _round_up(B, 8))
    Bp = _round_up(B, TB)
    xp = jnp.pad(x, ((0, Bp - B), (0, Kp - F))).astype(jnp.bfloat16)

    weights = [w.astype(jnp.bfloat16) for w in (w0f, w1f, w2f, w3p)]
    biases = [b.astype(jnp.float32) for b in (b0f, b1f, b2f, b3p)]

    def resident(shape):
        return pl.BlockSpec(shape, lambda i: (0, 0))

    in_specs = [pl.BlockSpec((TB, Kp), lambda i: (i, 0))]
    flat_wb = []
    for w, b in zip(weights, biases):
        in_specs += [resident(w.shape), resident(b.shape)]
        flat_wb += [w, b]

    out = pl.pallas_call(
        mlp_kernel,
        out_shape=jax.ShapeDtypeStruct((Bp, Cp), jnp.float32),
        grid=(Bp // TB,),
        in_specs=in_specs,
        out_specs=pl.BlockSpec((TB, Cp), lambda i: (i, 0)),
        compiler_params=pltpu.CompilerParams(
            dimension_semantics=("parallel",),
            vmem_limit_bytes=48 * 1024 * 1024,
        ),
    )(xp, *flat_wb)

    return out[:B, :C]


def init_params(key, num_features, num_classes):
    """Deterministic parameter init. Linear weights stored as [in, out]."""
    dims = [(num_features, 512), (512, 128), (128, 64), (64, num_classes)]
    keys = jax.random.split(key, len(dims) * 2)
    lin = []
    for li, (din, dout) in enumerate(dims):
        bound = 1.0 / jnp.sqrt(jnp.float32(din))
        w = jax.random.uniform(keys[2 * li], (din, dout), jnp.float32, -bound, bound)
        b = jax.random.uniform(keys[2 * li + 1], (1, dout), jnp.float32, -bound, bound)
        lin.append((w, b))

    flat = []
    bn_dims = [512, 128, 64]
    for li, (w, b) in enumerate(lin):
        flat.extend([w, b])
        if li < 3:
            d = bn_dims[li]
            gamma = jnp.ones((1, d), jnp.float32)
            beta = jnp.zeros((1, d), jnp.float32)
            # non-trivial running stats so the BN fold is exercised
            running_mean = 0.05 * jnp.arange(d, dtype=jnp.float32).reshape(1, d) / d
            running_var = 1.0 + 0.1 * jnp.arange(d, dtype=jnp.float32).reshape(1, d) / d
            flat.extend([gamma, beta, running_mean, running_var])
    return flat


def reference_forward(x, params):
    (w0, b0, g1, be1, m1, v1,
     w1, b1, g2, be2, m2, v2,
     w2, b2, g3, be3, m3, v3,
     w3, b3) = params
    h = x @ w0 + b0
    h = jnp.maximum(_bn(h, g1, be1, m1, v1), 0.0)
    h = h @ w1 + b1
    h = jnp.maximum(_bn(h, g2, be2, m2, v2), 0.0)
    h = h @ w2 + b2
    h = jnp.maximum(_bn(h, g3, be3, m3, v3), 0.0)
    return h @ w3 + b3


if __name__ == "__main__":
    num_features = 16
    num_classes = 4
    batch = 8

    key = jax.random.PRNGKey(0)
    k_x, k_p = jax.random.split(key)
    x = jax.random.normal(k_x, (batch, num_features), jnp.float32)
    params = init_params(k_p, num_features, num_classes)

    out = spotify_mood_forward(x, params)
    out = jax.block_until_ready(out)

    ref = reference_forward(x, params)
    assert out.shape == (batch, num_classes)
    # bf16 weights/activations into the MXU (f32 accumulation) -> loose tolerance
    assert jnp.allclose(out, ref, atol=5e-2, rtol=5e-2), "mismatch vs JAX reference"

    print("KERNEL_OK")
</pallas_src>

<mosaic_0001>
module attributes {stable_mosaic.version = 11 : i64} {
  func.func @mlp_kernel(%arg0: i32, %arg1: memref<8x128xbf16, #tpu.memory_space<vmem>>, %arg2: memref<128x512xbf16, #tpu.memory_space<vmem>>, %arg3: memref<1x512xf32, #tpu.memory_space<vmem>>, %arg4: memref<512x128xbf16, #tpu.memory_space<vmem>>, %arg5: memref<1x128xf32, #tpu.memory_space<vmem>>, %arg6: memref<128x64xbf16, #tpu.memory_space<vmem>>, %arg7: memref<1x64xf32, #tpu.memory_space<vmem>>, %arg8: memref<64x128xbf16, #tpu.memory_space<vmem>>, %arg9: memref<1x128xf32, #tpu.memory_space<vmem>>, %arg10: memref<8x128xf32, #tpu.memory_space<vmem>>) attributes {dimension_semantics = [#tpu.dimension_semantics<parallel>], iteration_bounds = array<i64: 1>, scalar_prefetch = 0 : i64, scratch_operands = 0 : i64, tpu.core_type = #tpu.core_type<tc>, window_params = [{transform_indices = @transform_0, window_bounds = array<i64: 8, 128>}, {pipeline_mode = #tpu.pipeline_mode<synchronous>, transform_indices = @transform_1, window_bounds = array<i64: 128, 512>}, {pipeline_mode = #tpu.pipeline_mode<synchronous>, transform_indices = @transform_2, window_bounds = array<i64: 1, 512>}, {pipeline_mode = #tpu.pipeline_mode<synchronous>, transform_indices = @transform_3, window_bounds = array<i64: 512, 128>}, {pipeline_mode = #tpu.pipeline_mode<synchronous>, transform_indices = @transform_4, window_bounds = array<i64: 1, 128>}, {pipeline_mode = #tpu.pipeline_mode<synchronous>, transform_indices = @transform_5, window_bounds = array<i64: 128, 64>}, {pipeline_mode = #tpu.pipeline_mode<synchronous>, transform_indices = @transform_6, window_bounds = array<i64: 1, 64>}, {pipeline_mode = #tpu.pipeline_mode<synchronous>, transform_indices = @transform_7, window_bounds = array<i64: 64, 128>}, {pipeline_mode = #tpu.pipeline_mode<synchronous>, transform_indices = @transform_8, window_bounds = array<i64: 1, 128>}, {transform_indices = @transform_9, window_bounds = array<i64: 8, 128>}]} {
    %c0 = arith.constant 0 : index
    %c0_0 = arith.constant 0 : index
    %0 = vector.load %arg1[%c0, %c0_0] : memref<8x128xbf16, #tpu.memory_space<vmem>>, vector<8x128xbf16>
    %c0_1 = arith.constant 0 : index
    %c0_2 = arith.constant 0 : index
    %1 = vector.load %arg2[%c0_1, %c0_2] : memref<128x512xbf16, #tpu.memory_space<vmem>>, vector<128x512xbf16>
    %cst = arith.constant dense<0.000000e+00> : vector<8x512xf32>
    %2 = tpu.matmul %0, %1, %cst {dimension_numbers = #tpu.dot_dimension_numbers<[1], [0], [0], [1], [0, 0, 1, 1], [], []>} : vector<8x128xbf16>, vector<128x512xbf16>, vector<8x512xf32> -> vector<8x512xf32>
    %c0_3 = arith.constant 0 : index
    %c0_4 = arith.constant 0 : index
    %3 = vector.load %arg3[%c0_3, %c0_4] : memref<1x512xf32, #tpu.memory_space<vmem>>, vector<1x512xf32>
    %4 = vector.broadcast %3 : vector<1x512xf32> to vector<8x512xf32>
    %5 = arith.addf %2, %4 : vector<8x512xf32>
    %cst_5 = arith.constant 0.000000e+00 : f32
    %6 = vector.broadcast %cst_5 : f32 to vector<8x512xf32>
    %7 = arith.maximumf %5, %6 : vector<8x512xf32>
    %8 = arith.truncf %7 : vector<8x512xf32> to vector<8x512xbf16>
    %c0_6 = arith.constant 0 : index
    %c0_7 = arith.constant 0 : index
    %9 = vector.load %arg4[%c0_6, %c0_7] : memref<512x128xbf16, #tpu.memory_space<vmem>>, vector<512x128xbf16>
    %cst_8 = arith.constant dense<0.000000e+00> : vector<8x128xf32>
    %10 = tpu.matmul %8, %9, %cst_8 {dimension_numbers = #tpu.dot_dimension_numbers<[1], [0], [0], [1], [0, 0, 1, 1], [], []>} : vector<8x512xbf16>, vector<512x128xbf16>, vector<8x128xf32> -> vector<8x128xf32>
    %c0_9 = arith.constant 0 : index
    %c0_10 = arith.constant 0 : index
    %11 = vector.load %arg5[%c0_9, %c0_10] : memref<1x128xf32, #tpu.memory_space<vmem>>, vector<1x128xf32>
    %12 = vector.broadcast %11 : vector<1x128xf32> to vector<8x128xf32>
    %13 = arith.addf %10, %12 : vector<8x128xf32>
    %cst_11 = arith.constant 0.000000e+00 : f32
    %14 = vector.broadcast %cst_11 : f32 to vector<8x128xf32>
    %15 = arith.maximumf %13, %14 : vector<8x128xf32>
    %16 = arith.truncf %15 : vector<8x128xf32> to vector<8x128xbf16>
    %c0_12 = arith.constant 0 : index
    %c0_13 = arith.constant 0 : index
    %17 = vector.load %arg6[%c0_12, %c0_13] : memref<128x64xbf16, #tpu.memory_space<vmem>>, vector<128x64xbf16>
    %cst_14 = arith.constant dense<0.000000e+00> : vector<8x64xf32>
    %18 = tpu.matmul %16, %17, %cst_14 {dimension_numbers = #tpu.dot_dimension_numbers<[1], [0], [0], [1], [0, 0, 1, 1], [], []>} : vector<8x128xbf16>, vector<128x64xbf16>, vector<8x64xf32> -> vector<8x64xf32>
    %c0_15 = arith.constant 0 : index
    %c0_16 = arith.constant 0 : index
    %19 = vector.load %arg7[%c0_15, %c0_16] : memref<1x64xf32, #tpu.memory_space<vmem>>, vector<1x64xf32>
    %20 = vector.broadcast %19 : vector<1x64xf32> to vector<8x64xf32>
    %21 = arith.addf %18, %20 : vector<8x64xf32>
    %cst_17 = arith.constant 0.000000e+00 : f32
    %22 = vector.broadcast %cst_17 : f32 to vector<8x64xf32>
    %23 = arith.maximumf %21, %22 : vector<8x64xf32>
    %24 = arith.truncf %23 : vector<8x64xf32> to vector<8x64xbf16>
    %c0_18 = arith.constant 0 : index
    %c0_19 = arith.constant 0 : index
    %25 = vector.load %arg8[%c0_18, %c0_19] : memref<64x128xbf16, #tpu.memory_space<vmem>>, vector<64x128xbf16>
    %cst_20 = arith.constant dense<0.000000e+00> : vector<8x128xf32>
    %26 = tpu.matmul %24, %25, %cst_20 {dimension_numbers = #tpu.dot_dimension_numbers<[1], [0], [0], [1], [0, 0, 1, 1], [], []>} : vector<8x64xbf16>, vector<64x128xbf16>, vector<8x128xf32> -> vector<8x128xf32>
    %c0_21 = arith.constant 0 : index
    %c0_22 = arith.constant 0 : index
    %27 = vector.load %arg9[%c0_21, %c0_22] : memref<1x128xf32, #tpu.memory_space<vmem>>, vector<1x128xf32>
    %28 = vector.broadcast %27 : vector<1x128xf32> to vector<8x128xf32>
    %29 = arith.addf %26, %28 : vector<8x128xf32>
    %c0_23 = arith.constant 0 : index
    %c0_24 = arith.constant 0 : index
    %30 = vector.load %arg10[%c0_23, %c0_24] : memref<8x128xf32, #tpu.memory_space<vmem>>, vector<8x128xf32>
    tpu.vector_store %arg10[%c0_23, %c0_24], %29 {strides = array<i32>} : memref<8x128xf32, #tpu.memory_space<vmem>>, vector<8x128xf32>,
    return
  }
  func.func @transform_0(%arg0: i32) -> (i32, i32) {
    %c0_i32 = arith.constant 0 : i32
    %c0_i32_0 = arith.constant 0 : i32
    return %arg0, %c0_i32 : i32, i32
  }
  func.func @transform_1(%arg0: i32) -> (i32, i32) {
    %c0_i32 = arith.constant 0 : i32
    %c0_i32_0 = arith.constant 0 : i32
    %c0_i32_1 = arith.constant 0 : i32
    return %c0_i32, %c0_i32_0 : i32, i32
  }
  func.func @transform_2(%arg0: i32) -> (i32, i32) {
    %c0_i32 = arith.constant 0 : i32
    %c0_i32_0 = arith.constant 0 : i32
    %c0_i32_1 = arith.constant 0 : i32
    return %c0_i32, %c0_i32_0 : i32, i32
  }
  func.func @transform_3(%arg0: i32) -> (i32, i32) {
    %c0_i32 = arith.constant 0 : i32
    %c0_i32_0 = arith.constant 0 : i32
    %c0_i32_1 = arith.constant 0 : i32
    return %c0_i32, %c0_i32_0 : i32, i32
  }
  func.func @transform_4(%arg0: i32) -> (i32, i32) {
    %c0_i32 = arith.constant 0 : i32
    %c0_i32_0 = arith.constant 0 : i32
    %c0_i32_1 = arith.constant 0 : i32
    return %c0_i32, %c0_i32_0 : i32, i32
  }
  func.func @transform_5(%arg0: i32) -> (i32, i32) {
    %c0_i32 = arith.constant 0 : i32
    %c0_i32_0 = arith.constant 0 : i32
    %c0_i32_1 = arith.constant 0 : i32
    return %c0_i32, %c0_i32_0 : i32, i32
  }
  func.func @transform_6(%arg0: i32) -> (i32, i32) {
    %c0_i32 = arith.constant 0 : i32
    %c0_i32_0 = arith.constant 0 : i32
    %c0_i32_1 = arith.constant 0 : i32
    return %c0_i32, %c0_i32_0 : i32, i32
  }
  func.func @transform_7(%arg0: i32) -> (i32, i32) {
    %c0_i32 = arith.constant 0 : i32
    %c0_i32_0 = arith.constant 0 : i32
    %c0_i32_1 = arith.constant 0 : i32
    return %c0_i32, %c0_i32_0 : i32, i32
  }
  func.func @transform_8(%arg0: i32) -> (i32, i32) {
    %c0_i32 = arith.constant 0 : i32
    %c0_i32_0 = arith.constant 0 : i32
    %c0_i32_1 = arith.constant 0 : i32
    return %c0_i32, %c0_i32_0 : i32, i32
  }
  func.func @transform_9(%arg0: i32) -> (i32, i32) {
    %c0_i32 = arith.constant 0 : i32
    %c0_i32_0 = arith.constant 0 : i32
    return %arg0, %c0_i32 : i32, i32
  }
}

</mosaic_0001>

<bundles_post_ra>
// kernel: tpu_custom_call.1
= control target key start
LH: loop header
LB: loop body
LE: loop exit
PB: predicated region body
PF: predicated region fallthrough
CT: control target
= control target key end

     0   :  { %14 = vsyncpa [#allocation3], 0  ;;  %s1397_s0 = inlined_call_operand.vmem [shape: bf16[8,128], index: 0, kind: input, shape index: {}]   ;;  %s1398_s1 = inlined_call_operand.hbm [shape: bf16[128,512], index: 1, kind: input, shape index: {}]   ;;  %s1399_s2 = inlined_call_operand.vmem [shape: f32[1,512], index: 2, kind: input, shape index: {}]   ;;  %s1400_s3 = inlined_call_operand.hbm [shape: bf16[512,128], index: 3, kind: input, shape index: {}]   ;;  %s1401_s4 = inlined_call_operand.vmem [shape: f32[1,128], index: 4, kind: input, shape index: {}]   ;;  %s1402_s5 = inlined_call_operand.vmem [shape: bf16[128,64], index: 5, kind: input, shape index: {}]   ;;  %s1403_s6 = inlined_call_operand.vmem [shape: f32[1,64], index: 6, kind: input, shape index: {}]   ;;  %s1404_s7 = inlined_call_operand.vmem [shape: bf16[64,128], index: 7, kind: input, shape index: {}]   ;;  %s1405_s8 = inlined_call_operand.vmem [shape: f32[1,128], index: 8, kind: input, shape index: {}]   ;;  %s1406_s9 = inlined_call_operand.hbm [shape: f32[8,128], index: 9, kind: output, shape index: {}]  }
   0x1   :  { %15 = vsyncpa [#allocation6], 0 }
   0x2   :  { %16 = vsyncpa [#allocation4], 0  ;;  %s1263_s30 = smov [#allocation2]  }
   0x3   :  { %s24_s10 = sshll.u32 %s1263_s30, 4  ;;  %s25_s10 = int_to_ptr.vmem [resolvable:$true] %s24_s10 }
   0x4   :  { %s1205_s11 = scalar_lea.vmem %s25_s10, 4096  ;;  %p1210_p1 = scmp.lt.s32.totalorder %s25_s10, %s25_s10 }
   0x5   :  { %p1206_p0 = scmp.ne.s32.totalorder %s25_s10, %s1205_s11  ;;  %p1211_p2 = scmp.lt.s32.totalorder %s1205_s11, %s1205_s11 }
   0x7   :  { %p1212_p3 = por %p1211_p2, %p1210_p1 }
   0x9   :  { %p1213_p4 = pnand %p1212_p3, %p1206_p0 }
   0xb   :  { %1216 = shalt.err (!%p1213_p4)
}
   0xc   :  { %s1264_s12 = smov 256   ;;  %s1265_s13 = smov 16  }
   0xd   :  { %30 = dma.hbm_to_vmem [thread:$0]  %s1398_s1, 4096, %s25_s10, [#allocation3], %s1264_s12, %s1264_s12, %s1265_s13  }
   0xe   :  { %s1266_s16 = smov [#allocation5]  }
   0xf   :  { %s38_s17 = sshll.u32 %s1266_s16, 4  ;;  %s39_s17 = int_to_ptr.vmem [resolvable:$true] %s38_s17 }
  0x10   :  { %s1225_s18 = scalar_lea.vmem %s39_s17, 4096  ;;  %p1230_p6 = scmp.lt.s32.totalorder %s39_s17, %s39_s17 }
  0x11   :  { %p1226_p5 = scmp.ne.s32.totalorder %s39_s17, %s1225_s18  ;;  %p1231_p7 = scmp.lt.s32.totalorder %s1225_s18, %s1225_s18 }
  0x13   :  { %p1232_p8 = por %p1231_p7, %p1230_p6 }
  0x15   :  { %p1233_p9 = pnand %p1232_p8, %p1226_p5 }
  0x17   :  { %1236 = shalt.err (!%p1233_p9)
}
  0x18   :  { %s1267_s19 = smov 64   ;;  %s1268_s20 = smov 4  }
  0x19   :  { %44 = dma.hbm_to_vmem [thread:$0]  %s1400_s3, 4096, %s39_s17, [#allocation6], %s1267_s19, %s1267_s19, %s1268_s20  }
  0x1a   :  { %1257 = dma.done.wait [#allocation3], 4096  }
  0x1b   :  { %1258 = vsyncadd [#allocation3], 4294963200 }
  0x1c   :  { %1259 = dma.done.wait [#allocation6], 4096  }
  0x1d   :  { %1260 = vsyncadd [#allocation6], 4294963200  ;;  %v1269_v0 = vmov 0   ;;  %v1105_v1 = vld [vmem:[#allocation2 + $0xe4] ss:$16 sps:$4 sm:$0xff]   ;;  %v1153_v33 = vld [vmem:[#allocation5 + $0x78] sm:$0xff]  }
  0x1e   :  { %309 = vmatprep.mubr.bf16.mxu0 %v1269_v0  ;;  %350 = vmatprep.mubr.bf16.mxu1 %v1269_v0  ;;  %v1107_v2 = vld [vmem:[#allocation2 + $0xec] ss:$16 sps:$4 sm:$0xff]   ;;  %v1109_v3 = vld [vmem:[#allocation2 + $0xe0] ss:$16 sps:$4 sm:$0xff]   ;;  %v1110_v4 = vld [vmem:[#allocation2 + $0xe8] ss:$16 sps:$4 sm:$0xff]  }
  0x1f   :  { %277 = vmatprep.subr.bf16.mxu0 %v1105_v1  ;;  %318 = vmatprep.subr.bf16.mxu1 %v1107_v2  ;;  %v1111_v5 = vld [vmem:[#allocation2 + $0xc4] ss:$16 sps:$4 sm:$0xff]   ;;  %v1113_v6 = vld [vmem:[#allocation2 + $0xcc] ss:$16 sps:$4 sm:$0xff]   ;;  %v1115_v7 = vld [vmem:[#allocation2 + $0xc0] ss:$16 sps:$4 sm:$0xff]  }
  0x20   :  { %278 = vmatpush1.bf16.msra.mxu0 %v1109_v3  ;;  %319 = vmatpush1.bf16.msra.mxu1 %v1110_v4  ;;  %v1116_v8 = vld [vmem:[#allocation2 + $0xc8] ss:$16 sps:$4 sm:$0xff]   ;;  %v1117_v9 = vld [vmem:[#allocation2 + $0xa4] ss:$16 sps:$4 sm:$0xff]   ;;  %v1119_v10 = vld [vmem:[#allocation2 + $0xac] ss:$16 sps:$4 sm:$0xff]   ;;  %v97_v3 = vlaneseq }
  0x21   :  { %279 = vmatprep.subr.bf16.mxu0 %v1111_v5  ;;  %320 = vmatprep.subr.bf16.mxu1 %v1113_v6  ;;  %v1121_v11 = vld [vmem:[#allocation2 + $0xa0] ss:$16 sps:$4 sm:$0xff]   ;;  %v1122_v12 = vld [vmem:[#allocation2 + $0xa8] ss:$16 sps:$4 sm:$0xff]   ;;  %v1123_v13 = vld [vmem:[#allocation2 + $0x84] ss:$16 sps:$4 sm:$0xff]  }
  0x22   :  { %v1125_v14 = vld [vmem:[#allocation2 + $0x8c] ss:$16 sps:$4 sm:$0xff]   ;;  %v1127_v15 = vld [vmem:[#allocation2 + $0x80] ss:$16 sps:$4 sm:$0xff]   ;;  %v1128_v16 = vld [vmem:[#allocation2 + $0x88] ss:$16 sps:$4 sm:$0xff]  }
  0x23   :  { %v1129_v17 = vld [vmem:[#allocation2 + $0x64] ss:$16 sps:$4 sm:$0xff]   ;;  %v1131_v18 = vld [vmem:[#allocation2 + $0x6c] ss:$16 sps:$4 sm:$0xff]   ;;  %v1133_v19 = vld [vmem:[#allocation2 + $0x60] ss:$16 sps:$4 sm:$0xff]  }
  0x24   :  { %280 = vmatpush1.bf16.msra.mxu0 %v1115_v7  ;;  %321 = vmatpush1.bf16.msra.mxu1 %v1116_v8  ;;  %v1134_v20 = vld [vmem:[#allocation2 + $0x68] ss:$16 sps:$4 sm:$0xff]   ;;  %v1135_v21 = vld [vmem:[#allocation2 + $0x44] ss:$16 sps:$4 sm:$0xff]   ;;  %v1137_v22 = vld [vmem:[#allocation2 + $0x4c] ss:$16 sps:$4 sm:$0xff]  }
  0x25   :  { %281 = vmatprep.subr.bf16.mxu0 %v1117_v9  ;;  %322 = vmatprep.subr.bf16.mxu1 %v1119_v10  ;;  %v1139_v23 = vld [vmem:[#allocation2 + $0x40] ss:$16 sps:$4 sm:$0xff]   ;;  %v1140_v24 = vld [vmem:[#allocation2 + $0x48] ss:$16 sps:$4 sm:$0xff]   ;;  %v1141_v25 = vld [vmem:[#allocation2 + $0x24] ss:$16 sps:$4 sm:$0xff]  }
  0x26   :  { %v1143_v26 = vld [vmem:[#allocation2 + $0x2c] ss:$16 sps:$4 sm:$0xff]   ;;  %v1145_v27 = vld [vmem:[#allocation2 + $0x20] ss:$16 sps:$4 sm:$0xff]   ;;  %v1146_v28 = vld [vmem:[#allocation2 + $0x28] ss:$16 sps:$4 sm:$0xff]  }
  0x27   :  { %v1147_v29 = vld [vmem:[#allocation2 + $0x4] ss:$16 sps:$4 sm:$0xff]   ;;  %v1149_v30 = vld [vmem:[#allocation2 + $0xc] ss:$16 sps:$4 sm:$0xff]   ;;  %v1151_v31 = vld [vmem:[#allocation2] ss:$16 sps:$4 sm:$0xff]  }
  0x28   :  { %282 = vmatpush1.bf16.msra.mxu0 %v1121_v11  ;;  %323 = vmatpush1.bf16.msra.mxu1 %v1122_v12  ;;  %v1152_v32 = vld [vmem:[#allocation2 + $0x8] ss:$16 sps:$4 sm:$0xff]   ;;  %v62_v35 = vld [vmem:[%s1397_s0] sm:$0xf]  ;;  %v1157_v38 = vld [vmem:[#allocation5 + $0x70] sm:$0xff]   ;;  %v1270_v2 = vmov 0.0  }
  0x29   :  { %283 = vmatprep.subr.bf16.mxu0 %v1123_v13  ;;  %324 = vmatprep.subr.bf16.mxu1 %v1125_v14  ;;  %v1154_v34 = vld [vmem:[#allocation5 + $0xf8] sm:$0xff]   ;;  %v1158_v39 = vld [vmem:[#allocation5 + $0xf0] sm:$0xff]   ;;  %v1161_v42 = vld [vmem:[#allocation5 + $0x68] sm:$0xff]   ;;  %v98_v4 = vshrl.u32 %v97_v3, 7  ;;  %vm1271_vm0 = vmmov 0   ;;  %vm864_vm1 = vcmask 523264  }
  0x2a   :  { %v1155_v36 = vld [vmem:[#allocation5 + $0x38] sm:$0xff]   ;;  %v1159_v40 = vld [vmem:[#allocation5 + $0x30] sm:$0xff]   ;;  %v1162_v43 = vld [vmem:[#allocation5 + $0xe8] sm:$0xff]   ;;  %s1272_s26 = smov [#allocation7]  }
  0x2b   :  { %v1156_v37 = vld [vmem:[#allocation5 + $0xb8] sm:$0xff]   ;;  %v1160_v41 = vld [vmem:[#allocation5 + $0xb0] sm:$0xff]   ;;  %v1163_v44 = vld [vmem:[#allocation5 + $0x28] sm:$0xff]   ;;  %v99_v5 = vsub.s32 0, %v98_v4  ;;  %v107_v6 = vsub.s32 2, %v98_v4  ;;  %v103_v8 = vsub.s32 1, %v98_v4 }
  0x2c   :  { %284 = vmatpush1.bf16.msra.mxu0 %v1127_v15  ;;  %325 = vmatpush1.bf16.msra.mxu1 %v1128_v16  ;;  %v1164_v45 = vld [vmem:[#allocation5 + $0xa8] sm:$0xff]   ;;  %v1165_v46 = vld [vmem:[#allocation5 + $0x60] sm:$0xff]   ;;  %v1169_v50 = vld [vmem:[#allocation5 + $0x58] sm:$0xff]   ;;  %v111_v9 = vsub.s32 3, %v98_v4 }
  0x2d   :  { %285 = vmatprep.subr.bf16.mxu0 %v1129_v17  ;;  %326 = vmatprep.subr.bf16.mxu1 %v1131_v18  ;;  %v1166_v47 = vld [vmem:[#allocation5 + $0xe0] sm:$0xff]   ;;  %v1170_v51 = vld [vmem:[#allocation5 + $0xd8] sm:$0xff]   ;;  %v1173_v54 = vld [vmem:[#allocation5 + $0x50] sm:$0xff]  }
  0x2e   :  { %v1167_v48 = vld [vmem:[#allocation5 + $0x20] sm:$0xff]   ;;  %v1171_v52 = vld [vmem:[#allocation5 + $0x18] sm:$0xff]   ;;  %v1174_v55 = vld [vmem:[#allocation5 + $0xd0] sm:$0xff]  }
  0x2f   :  { %v1168_v49 = vld [vmem:[#allocation5 + $0xa0] sm:$0xff]   ;;  %v1172_v53 = vld [vmem:[#allocation5 + $0x98] sm:$0xff]   ;;  %v1175_v56 = vld [vmem:[#allocation5 + $0x10] sm:$0xff]  }
  0x30   :  { %286 = vmatpush1.bf16.msra.mxu0 %v1133_v19  ;;  %327 = vmatpush1.bf16.msra.mxu1 %v1134_v20  ;;  %v1176_v57 = vld [vmem:[#allocation5 + $0x90] sm:$0xff]   ;;  %v1177_v58 = vld [vmem:[#allocation5 + $0x48] sm:$0xff]   ;;  %v1181_v62 = vld [vmem:[#allocation5 + $0x40] sm:$0xff]  }
  0x31   :  { %287 = vmatprep.subr.bf16.mxu0 %v1135_v21  ;;  %328 = vmatprep.subr.bf16.mxu1 %v1137_v22  ;;  %v1178_v59 = vld [vmem:[#allocation5 + $0xc8] sm:$0xff]   ;;  %v1182_v63 = vld [vmem:[#allocation5 + $0xc0] sm:$0xff]  }
  0x32   :  { %v1179_v60 = vld [vmem:[#allocation5 + $0x8] sm:$0xff]   ;;  %v1183_v0 = vld [vmem:[#allocation5] sm:$0xff]  }
  0x33   :  { %v1180_v61 = vld [vmem:[#allocation5 + $0x88] sm:$0xff]   ;;  %v1184_v1 = vld [vmem:[#allocation5 + $0x80] sm:$0xff]  }
  0x34   :  { %288 = vmatpush1.bf16.msra.mxu0 %v1139_v23  ;;  %329 = vmatpush1.bf16.msra.mxu1 %v1140_v24  ;;  %v95_v7 = vld [vmem:[%s1399_s2] sm:$0xf] }
  0x35   :  { %289 = vmatprep.subr.bf16.mxu0 %v1141_v25  ;;  %330 = vmatprep.subr.bf16.mxu1 %v1143_v26  ;;  %v100_v10 = vrot.slane %v95_v7, %v99_v5  ;;  %v108_v11 = vrot.slane %v95_v7, %v107_v6  ;;  %v104_v12 = vrot.slane %v95_v7, %v103_v8 }
  0x36   :  { %v112_v13 = vrot.slane %v95_v7, %v111_v9 }
  0x38   :  { %290 = vmatpush1.bf16.msra.mxu0 %v1145_v27  ;;  %331 = vmatpush1.bf16.msra.mxu1 %v1146_v28 }
  0x39   :  { %291 = vmatprep.subr.bf16.mxu0 %v1147_v29  ;;  %332 = vmatprep.subr.bf16.mxu1 %v1149_v30 }
  0x3c   :  { %292 = vmatpush1.bf16.msra.mxu0 %v1151_v31  ;;  %333 = vmatpush1.bf16.msra.mxu1 %v1152_v32 }
  0x3d   :  { %1005 = vmatprep.subr.bf16.mxu0 %v1153_v33  ;;  %1027 = vmatprep.subr.bf16.mxu1 %v1154_v34  ;;  %v1185_v33 = vld [vmem:[%s1402_s5 + $0x38] sm:$0xff]  }
  0x3f   :  { %310 = vmatmul.mubr.bf16.vlgmr.msra.gmra.mxu0 %v62_v35  ;;  %351 = vmatmul.mubr.bf16.vlgmr.msra.gmra.mxu1 %v62_v35  ;;  %v1186_v35 = vld [vmem:[%s1402_s5 + $0x30] sm:$0xff]  }
  0x40   :  { %1006 = vmatpush3.bf16.msra.mxu0 %v1155_v36  ;;  %1028 = vmatpush3.bf16.msra.mxu1 %v1156_v37  ;;  %v1187_v36 = vld [vmem:[%s1402_s5 + $0x28] sm:$0xff]   ;;  %v1188_v37 = vld [vmem:[%s1402_s5 + $0x20] sm:$0xff]  }
  0x41   :  { %1007 = vmatprep.subr.bf16.mxu0 %v1157_v38  ;;  %1029 = vmatprep.subr.bf16.mxu1 %v1158_v39  ;;  %v1189_v38 = vld [vmem:[%s1402_s5 + $0x18] sm:$0xff]   ;;  %v1190_v39 = vld [vmem:[%s1402_s5 + $0x10] sm:$0xff]  }
  0x44   :  { %1008 = vmatpush3.bf16.msra.mxu0 %v1159_v40  ;;  %1030 = vmatpush3.bf16.msra.mxu1 %v1160_v41  ;;  %v1191_v40 = vld [vmem:[%s1402_s5 + $0x8] sm:$0xff]   ;;  %v1192_v41 = vld [vmem:[%s1402_s5] sm:$0xff]  }
  0x45   :  { %1009 = vmatprep.subr.bf16.mxu0 %v1161_v42  ;;  %1031 = vmatprep.subr.bf16.mxu1 %v1162_v43  ;;  %v1193_v42 = vld [vmem:[%s1404_s7 + $0x18] sm:$0xff]   ;;  %v1194_v43 = vld [vmem:[%s1404_s7 + $0x10] sm:$0xff]  }
  0x48   :  { %1010 = vmatpush3.bf16.msra.mxu0 %v1163_v44  ;;  %1032 = vmatpush3.bf16.msra.mxu1 %v1164_v45 }
  0x49   :  { %1011 = vmatprep.subr.bf16.mxu0 %v1165_v46  ;;  %1033 = vmatprep.subr.bf16.mxu1 %v1166_v47  ;;  %v957_v46 = vld [vmem:[%s1401_s4] ss:$0 sm:$0xff] }
  0x4c   :  { %1012 = vmatpush3.bf16.msra.mxu0 %v1167_v48  ;;  %1034 = vmatpush3.bf16.msra.mxu1 %v1168_v49 }
  0x4d   :  { %1013 = vmatprep.subr.bf16.mxu0 %v1169_v50  ;;  %1035 = vmatprep.subr.bf16.mxu1 %v1170_v51 }
  0x50   :  { %1014 = vmatpush3.bf16.msra.mxu0 %v1171_v52  ;;  %1036 = vmatpush3.bf16.msra.mxu1 %v1172_v53 }
  0x51   :  { %1015 = vmatprep.subr.bf16.mxu0 %v1173_v54  ;;  %1037 = vmatprep.subr.bf16.mxu1 %v1174_v55 }
  0x54   :  { %1016 = vmatpush3.bf16.msra.mxu0 %v1175_v56  ;;  %1038 = vmatpush3.bf16.msra.mxu1 %v1176_v57 }
  0x55   :  { %1017 = vmatprep.subr.bf16.mxu0 %v1177_v58  ;;  %1039 = vmatprep.subr.bf16.mxu1 %v1178_v59  ;;  %v1195_v59 = vld [vmem:[%s1404_s7 + $0x8] sm:$0xff]  }
  0x58   :  { %1018 = vmatpush3.bf16.msra.mxu0 %v1179_v60  ;;  %1040 = vmatpush3.bf16.msra.mxu1 %v1180_v61  ;;  %v1196_v60 = vld [vmem:[%s1404_s7] sm:$0xff]   ;;  %s915_s7 = sshll.u32 %s1272_s26, 4  ;;  %s916_s7 = int_to_ptr.vmem [resolvable:$true] %s915_s7 }
  0x59   :  { %1019 = vmatprep.subr.bf16.mxu0 %v1181_v62  ;;  %1041 = vmatprep.subr.bf16.mxu1 %v1182_v63  ;;  %v990_v61 = vld [vmem:[%s1403_s6] ss:$0 sm:$0xff]  ;;  %s1237_s6 = scalar_lea.vmem %s916_s7, 128  ;;  %p1242_p11 = scmp.lt.s32.totalorder %s916_s7, %s916_s7 }
  0x5a   :  { %p1238_p10 = scmp.ne.s32.totalorder %s916_s7, %s1237_s6  ;;  %p1243_p12 = scmp.lt.s32.totalorder %s1237_s6, %s1237_s6 }
  0x5c   :  { %1020 = vmatpush3.bf16.msra.mxu0 %v1183_v0  ;;  %1042 = vmatpush3.bf16.msra.mxu1 %v1184_v1  ;;  %p1244_p13 = por %p1243_p12, %p1242_p11 }
  0x5d   :  { %1063 = vmatprep.subr.bf16.mxu0 %v1270_v2  ;;  %1083 = vmatprep.subr.bf16.mxu1 %v1270_v2 }
  0x5e   :  { %p1245_p0 = pnand %p1244_p13, %p1238_p10 }
  0xff   :  { %v311_v14 = vpop.f32.mrf.mxu0  ;;  %v352_v15 = vpop.f32.mrf.mxu1 }
 0x100   :  { %v312_v16 = vadd.f32 %v311_v14, %v100_v10  ;;  %v353_v17 = vadd.f32 %v352_v15, %v108_v11 }
 0x101   :  { %v313_v18 = vpop.f32.mrf.mxu0  ;;  %v354_v19 = vpop.f32.mrf.mxu1 }
 0x102   :  { %v361_v20 = vmax.f32 %v353_v17, 0.0  ;;  %v314_v21 = vadd.f32 %v313_v18, %v104_v12  ;;  %v355_v22 = vadd.f32 %v354_v19, %v112_v13  ;;  %v359_v23 = vmax.f32 %v312_v16, 0.0 }
 0x103   :  { %v315_v24 = vpop.f32.mrf.mxu0  ;;  %v356_v25 = vpop.f32.mrf.mxu1 }
 0x104   :  { %v360_v26 = vmax.f32 %v314_v21, 0.0  ;;  %v362_v27 = vmax.f32 %v355_v22, 0.0  ;;  %v365_v28 = vpack.c.bf16 %v361_v20, %v361_v20  ;;  %v363_v34 = vpack.c.bf16 %v359_v23, %v359_v23 }
 0x105   :  { %v316_v29 = vpop.f32.mrf.mxu0  ;;  %v357_v30 = vpop.f32.mrf.mxu1 }
 0x106   :  { %v364_v31 = vpack.c.bf16 %v360_v26, %v360_v26  ;;  %v366_v32 = vpack.c.bf16 %v362_v27, %v362_v27 }
 0x108   :  { %662 = vmatprep.mubr.bf16.mxu0 %v364_v31  ;;  %702 = vmatprep.mubr.bf16.mxu1 %v366_v32 }
 0x109   :  { %663 = vmatmul.mubr.bf16.vlgmr.msra.gmra.mxu0 %v363_v34  ;;  %703 = vmatmul.mubr.bf16.vlgmr.msra.gmra.mxu1 %v365_v28 }
 0x10a   :  { %1064 = vmatpush3.bf16.msra.mxu0 %v1185_v33  ;;  %1079 = vmatprep.mubr.msk.bf16.mxu0 %vm1271_vm0, %v1270_v2 }
 0x10b   :  { %1065 = vmatprep.subr.bf16.mxu0 %v1270_v2  ;;  %1091 = vmatprep.mubr.msk.bf16.mxu1 %vm1271_vm0, %v1270_v2 }
 0x10c   :  { %1084 = vmatpush3.bf16.msra.mxu1 %v1193_v42 }
 0x10d   :  { %1085 = vmatprep.subr.bf16.mxu1 %v1270_v2 }
 0x10e   :  { %1066 = vmatpush3.bf16.msra.mxu0 %v1186_v35 }
 0x10f   :  { %1067 = vmatprep.subr.bf16.mxu0 %v1270_v2 }
 0x110   :  { %1086 = vmatpush3.bf16.msra.mxu1 %v1194_v43 }
 0x111   :  { %1087 = vmatprep.subr.bf16.mxu1 %v1270_v2 }
 0x112   :  { %1068 = vmatpush3.bf16.msra.mxu0 %v1187_v36 }
 0x113   :  { %1069 = vmatprep.subr.bf16.mxu0 %v1270_v2 }
 0x114   :  { %1088 = vmatpush3.bf16.msra.mxu1 %v1195_v59 }
 0x115   :  { %1089 = vmatprep.subr.bf16.mxu1 %v1270_v2 }
 0x116   :  { %1070 = vmatpush3.bf16.msra.mxu0 %v1188_v37 }
 0x117   :  { %1071 = vmatprep.subr.bf16.mxu0 %v1270_v2 }
 0x118   :  { %1090 = vmatpush3.bf16.msra.mxu1 %v1196_v60 }
 0x11a   :  { %1072 = vmatpush3.bf16.msra.mxu0 %v1189_v38 }
 0x11b   :  { %1073 = vmatprep.subr.bf16.mxu0 %v1270_v2 }
 0x11e   :  { %1074 = vmatpush3.bf16.msra.mxu0 %v1190_v39 }
 0x11f   :  { %1075 = vmatprep.subr.bf16.mxu0 %v1270_v2 }
 0x122   :  { %1076 = vmatpush3.bf16.msra.mxu0 %v1191_v40 }
 0x123   :  { %1077 = vmatprep.subr.bf16.mxu0 %v1270_v2  ;;  %v999_v2 = vld [vmem:[%s1405_s8] ss:$0 sm:$0xff] }
 0x126   :  { %1078 = vmatpush3.bf16.msra.mxu0 %v1192_v41 }
 0x1c9   :  { %v1021_v44 = vpop.f32.mrf.mxu0  ;;  %v1043_v45 = vpop.f32.mrf.mxu1 }
 0x1cb   :  { %v1022_v47 = vpop.f32.mrf.mxu0  ;;  %v1044_v48 = vpop.f32.mrf.mxu1 }
 0x1cc   :  { %v1023_v49 = vadd.f32 %v1022_v47, %v1021_v44  ;;  %v1045_v53 = vadd.f32 %v1044_v48, %v1043_v45 }
 0x1cd   :  { %v1024_v50 = vpop.f32.mrf.mxu0  ;;  %v1046_v51 = vpop.f32.mrf.mxu1 }
 0x1ce   :  { %v665_v52 = vadd.f32 %v1023_v49, %v957_v46 }
 0x1cf   :  { %v1025_v54 = vpop.f32.mrf.mxu0  ;;  %v1047_v55 = vpop.f32.mrf.mxu1 }
 0x1d0   :  { %v705_v56 = vadd.f32 %v1045_v53, %v665_v52 }
 0x1d2   :  { %v710_v57 = vmax.f32 %v705_v56, 0.0 }
 0x1d4   :  { %v711_v58 = vpack.c.bf16 %v710_v57, %v710_v57 }
 0x1d6   :  { %1080 = vmatmul.mubr.bf16.vlgmr.msra.gmra.mxu0 %v711_v58 }
 0x296   :  { %v817_v62 = vpop.f32.mrf.mxu0 }
 0x297   :  { %v818_v63 = vadd.f32 %v990_v61, %v817_v62 }
 0x298   :  { %v1081_v0 = vpop.f32.mrf.mxu0 }
 0x299   :  { %v823_v1 = vmax.f32 %v818_v63, 0.0 }
 0x29a   :  { %v820_v3 = vpop.f32.mrf.mxu0 }
 0x29b   :  { %v824_v4 = vpack.c.bf16 %v823_v1, %v823_v1 }
 0x29c   :  { %v1082_v5 = vpop.f32.mrf.mxu0 }
 0x29d   :  { %1092 = vmatmul.mubr.msk.bf16.vlgmr.msra.gmra.mxu1 %vm864_vm1, %v824_v4 }
 0x35d   :  { %v902_v6 = vpop.f32.mrf.mxu1 }
 0x35e   :  { %v903_v7 = vadd.f32 %v999_v2, %v902_v6 }
 0x35f   :  { %v1093_v8 = vpop.f32.mrf.mxu1 }
 0x360   :  { %908 = vst [vmem:[#allocation7] sm:$0xff] %v903_v7 }
 0x361   :  { %v905_v9 = vpop.f32.mrf.mxu1 }
 0x362   :  { %1248 = shalt.err (!%p1245_p0)
}
 0x363   :  { %918 = dma.vmem_to_hbm [thread:$0]  %s916_s7, 128, %s1406_s9, [#allocation4]   ;;  %v1094_v10 = vpop.f32.mrf.mxu1 }
 0x364   :  { %1261 = dma.done.wait [#allocation4], 128  }
 0x365   :  { %1262 = vsyncadd [#allocation4], 4294967168 }
 0x366   :  { %922 = vsyncpa [#allocation3], 1 }
 0x367   :  { %923 = vsyncpa [#allocation6], 1 }
 0x368   :  { %924 = vsyncpa [#allocation4], 1 }

</bundles_post_ra>
